<compile_context>
chip_gen: v7x
topology: tpu7x:2x2x1
jax: 0.10.0
libtpu: 0.0.40
codegen_flags: <defaults>
</compile_context>

<pallas_src>
import functools
import math

import jax
import jax.numpy as jnp
from jax import lax
from jax.experimental import pallas as pl
from jax.experimental.pallas import tpu as pltpu


# ----------------------------------------------------------------------------
# Reference table construction (mirrors torch __init__; used only for testing)
# ----------------------------------------------------------------------------
def make_positional_encoding_table(max_len: int, dim: int) -> jnp.ndarray:
    """Builds the sinusoidal table pe of shape (max_len, 1, dim), float32."""
    position = jnp.arange(max_len, dtype=jnp.float32)[:, None]              # (L, 1)
    div_term = jnp.exp(
        jnp.arange(0, dim, 2, dtype=jnp.float32) * -(math.log(10000.0) / dim)
    )                                                                        # (D/2,)
    angles = position * div_term                                             # (L, D/2)
    pe = jnp.zeros((max_len, dim), dtype=jnp.float32)
    pe = pe.at[:, 0::2].set(jnp.sin(angles))
    pe = pe.at[:, 1::2].set(jnp.cos(angles))
    return pe[:, None, :]                                                    # (L, 1, D)


# ----------------------------------------------------------------------------
# Per-chip tuning (block-byte target, VMEM limit, minimum grid steps)
# ----------------------------------------------------------------------------
def _tpu_params():
    vmem_cap = 128 * 1024 * 1024
    num_cores = 1
    try:
        info = pltpu.get_tpu_info()
        vmem_cap = int(getattr(info, "vmem_capacity_bytes", vmem_cap) or vmem_cap)
        num_cores = int(getattr(info, "num_cores", 1) or 1)
    except Exception:
        pass  # non-TPU backend / interpret fallback: keep conservative defaults
    if vmem_cap <= 64 * 1024 * 1024:
        # v7x-class: 64 MiB VMEM, ~3.2 TB/s HBM. Bigger blocks amortize the ~0.35us
        # per-step cost; double-buffered in+out at 6 MiB is well under 64 MiB.
        return 6 * 1024 * 1024, 48 * 1024 * 1024, max(4, 2 * num_cores)
    # v5e/v6e-class: 128 MiB physical VMEM; ~4 MiB blocks sit at the HBM-roofline knee.
    return 4 * 1024 * 1024, 64 * 1024 * 1024, max(2, 2 * num_cores)


def _choose_row_tile(n_rows, d, itemsize, batch, target_bytes, min_steps):
    """Rows per block on the flattened (S*B, D) layout.

    Multiple of the sublane quantum and of `batch` (so every block covers whole
    sequence positions), sized to ~target_bytes, and capped so the grid keeps at
    least `min_steps` steps while blocks stay >= ~512 KiB (overlap + megacore).
    """
    lane_padded = -(-d // 128) * 128
    row_bytes = lane_padded * itemsize
    sub = 8 * max(1, 4 // max(1, itemsize))            # 8 (f32) / 16 (bf16) / 32 (i8)
    gran = sub * batch // math.gcd(sub, batch)         # lcm(sub, batch)
    if gran >= n_rows:
        return int(n_rows)                             # single full block
    rows = max(gran, (target_bytes // row_bytes) // gran * gran)
    cap = max(gran, (n_rows // min_steps) // gran * gran)
    if cap * row_bytes >= 512 * 1024:                  # only split if blocks stay big
        rows = min(rows, cap)
    return int(min(rows, n_rows))


# ----------------------------------------------------------------------------
# Pallas kernel: scale by sqrt(dim) + in-kernel sinusoid add (+ fused dropout)
# ----------------------------------------------------------------------------
def _pos_enc_kernel(step_ref, emb_ref, *rest, scale, keep_prob, apply_dropout,
                    use_step, batch):
    if apply_dropout:
        rand_ref, out_ref = rest
    else:
        (out_ref,) = rest

    rows, dim = emb_ref.shape
    x = emb_ref[...].astype(jnp.float32) * scale

    # ---- sinusoidal positional encoding generated on the fly (no pe DMA) ----
    lane = lax.broadcasted_iota(jnp.int32, (1, dim), 1)                 # 0..D-1
    two_k = (lane - (lane & 1)).astype(jnp.float32)                     # 2*floor(j/2)
    inv_freq = jnp.exp(two_k * (-math.log(10000.0) / dim))              # (1, D)
    phase = (lane & 1).astype(jnp.float32) * (math.pi / 2.0)            # cos = sin(x+pi/2)

    if use_step:
        pos = step_ref[0].astype(jnp.float32)                           # scalar position
    else:
        rows_per_pos = rows // batch                                    # rows % batch == 0
        base = (pl.program_id(0) * rows_per_pos).astype(jnp.float32)
        local = lax.broadcasted_iota(jnp.int32, (rows, 1), 0).astype(jnp.float32)
        if batch == 1:
            pos = base + local
        else:
            # floor((local + 0.5) / B) == local // B exactly for rows < 2**22
            pos = base + jnp.floor((local + 0.5) / float(batch))

    pe = jnp.sin(pos * inv_freq + phase)                                # (rows|1, D)
    x = x + pe

    if apply_dropout:
        keep = rand_ref[...] < keep_prob
        x = jnp.where(keep, x * (1.0 / keep_prob), 0.0)

    out_ref[...] = x.astype(out_ref.dtype)


# ----------------------------------------------------------------------------
# Wrapper
# ----------------------------------------------------------------------------
def positional_encoding_forward(emb, dim, step=None, dropout_p=0.0,
                                training=False, dropout_rng=None):
    """Forward of PositionalEncoding.  emb : (S, B, D) time-major."""
    S, B, D = emb.shape
    assert D == dim
    assert 0.0 <= float(dropout_p) < 1.0

    apply_dropout = bool(training) and float(dropout_p) > 0.0
    keep_prob = 1.0 - float(dropout_p)
    scale = float(math.sqrt(dim))
    use_step = step is not None

    n_rows = S * B
    itemsize = jnp.dtype(emb.dtype).itemsize
    target_bytes, vmem_limit, min_steps = _tpu_params()
    rows = _choose_row_tile(n_rows, D, itemsize, B, target_bytes, min_steps)
    grid = (pl.cdiv(n_rows, rows),)

    emb_flat = emb.reshape(n_rows, D)                  # free, contiguous reshape
    row_spec = pl.BlockSpec((rows, D), lambda i, step_ref: (i, 0))

    # `step` may be a Python int, numpy scalar, or a traced/device scalar
    # (consumed only through SMEM scalar prefetch — no host sync in decode loops).
    step_arr = jnp.asarray(0 if step is None else step, dtype=jnp.int32).reshape((1,))

    args = [step_arr, emb_flat]
    in_specs = [row_spec]
    if apply_dropout:
        if dropout_rng is None:
            dropout_rng = jax.random.PRNGKey(0)
        u = jax.random.uniform(dropout_rng, (n_rows, D), dtype=jnp.float32)
        args.append(u)
        in_specs.append(row_spec)

    kernel = functools.partial(_pos_enc_kernel, scale=scale, keep_prob=keep_prob,
                               apply_dropout=apply_dropout, use_step=use_step,
                               batch=B)

    out_flat = pl.pallas_call(
        kernel,
        out_shape=jax.ShapeDtypeStruct((n_rows, D), emb.dtype),
        grid_spec=pltpu.PrefetchScalarGridSpec(
            num_scalar_prefetch=1,                     # step lands in SMEM
            grid=grid,
            in_specs=in_specs,
            out_specs=row_spec,
        ),
        compiler_params=pltpu.CompilerParams(
            dimension_semantics=("parallel",),
            vmem_limit_bytes=vmem_limit,
        ),
        # emb (call-arg index 1, after the scalar-prefetch arg) is overwritten
        # in place with the output (same shape & dtype) -> no extra HBM alloc.
        input_output_aliases={1: 0},
    )(*args)
    return out_flat.reshape(S, B, D)


# ----------------------------------------------------------------------------
# Main: deterministic small-shape tests
# ----------------------------------------------------------------------------
if __name__ == "__main__":
    seq_len, batch, dim = 8, 2, 32
    max_len = 64          # small synthetic max_len (module default is 5000)

    key = jax.random.PRNGKey(0)
    emb = jax.random.normal(key, (seq_len, batch, dim), dtype=jnp.float32)
    pe = make_positional_encoding_table(max_len, dim)   # reference table only

    scale = math.sqrt(dim)
    ref = emb * scale + pe[:seq_len]
    ref_step = emb[:1] * scale + pe[3]

    # --- eval, step=None ------------------------------------------------------
    out = positional_encoding_forward(emb, dim, dropout_p=0.1, training=False)
    out = jax.block_until_ready(out)
    assert out.shape == (seq_len, batch, dim) and out.dtype == jnp.float32
    assert jnp.allclose(out, ref, atol=1e-4, rtol=1e-4)

    # --- eval, single decoding step (scalar-prefetched, traced-scalar-safe) ---
    out_step = positional_encoding_forward(emb[:1], dim, step=jnp.int32(3),
                                           dropout_p=0.1, training=False)
    out_step = jax.block_until_ready(out_step)
    assert jnp.allclose(out_step, ref_step, atol=1e-4, rtol=1e-4)

    # --- training: fused dropout mask (deterministic and exactly verifiable) --
    p = 0.5
    drop_key = jax.random.PRNGKey(1234)
    out_do = positional_encoding_forward(emb, dim, dropout_p=p, training=True,
                                         dropout_rng=drop_key)
    out_do = jax.block_until_ready(out_do)
    keep = 1.0 - p
    u = jax.random.uniform(drop_key, (seq_len * batch, dim),
                           dtype=jnp.float32).reshape(seq_len, batch, dim)
    expected = jnp.where(u < keep, ref * (1.0 / keep), 0.0)
    assert jnp.allclose(out_do, expected, atol=1e-4, rtol=1e-4)

    # --- multi-block grid on a larger, lane-dense shape ------------------------
    S2, B2, D2, L2 = 512, 8, 256, 1024
    emb2 = jax.random.normal(jax.random.PRNGKey(1), (S2, B2, D2), dtype=jnp.float32)
    pe2 = make_positional_encoding_table(L2, D2)
    ref2 = emb2 * math.sqrt(D2) + pe2[:S2]
    out2 = positional_encoding_forward(emb2, D2)
    out2 = jax.block_until_ready(out2)
    assert jnp.allclose(out2, ref2, atol=1e-3, rtol=1e-4)

    # --- small-batch bf16 path (B below the sublane quantum; flattened layout) -
    emb3 = jax.random.normal(jax.random.PRNGKey(2), (64, 2, 128), dtype=jnp.bfloat16)
    pe3 = make_positional_encoding_table(128, 128)
    ref3 = (emb3.astype(jnp.float32) * math.sqrt(128) + pe3[:64]).astype(jnp.bfloat16)
    out3 = positional_encoding_forward(emb3, 128)
    out3 = jax.block_until_ready(out3)
    assert out3.dtype == jnp.bfloat16
    assert jnp.allclose(out3.astype(jnp.float32), ref3.astype(jnp.float32),
                        atol=1e-2, rtol=2e-2)

    print("KERNEL_OK")
</pallas_src>

<mosaic_0001>
module attributes {stable_mosaic.version = 11 : i64} {
  func.func @_pos_enc_kernel(%arg0: i32, %arg1: memref<1xi32, #tpu.memory_space<smem>>, %arg2: memref<16x32xf32, #tpu.memory_space<vmem>>, %arg3: memref<16x32xf32, #tpu.memory_space<vmem>>) attributes {dimension_semantics = [#tpu.dimension_semantics<parallel>], iteration_bounds = array<i64: 1>, scalar_prefetch = 1 : i64, scratch_operands = 0 : i64, tpu.core_type = #tpu.core_type<tc>, window_params = [{transform_indices = @transform_0, window_bounds = array<i64: 16, 32>}, {transform_indices = @transform_1, window_bounds = array<i64: 16, 32>}]} {
    %c0 = arith.constant 0 : index
    %c0_0 = arith.constant 0 : index
    %0 = vector.load %arg2[%c0, %c0_0] : memref<16x32xf32, #tpu.memory_space<vmem>>, vector<16x32xf32>
    %cst = arith.constant 5.65685415 : f32
    %1 = vector.broadcast %cst : f32 to vector<16x32xf32>
    %2 = arith.mulf %0, %1 : vector<16x32xf32>
    %3 = tpu.iota {dimensions = array<i32: 1>} : vector<1x32xi32>
    %c1_i32 = arith.constant 1 : i32
    %4 = vector.broadcast %c1_i32 : i32 to vector<1x32xi32>
    %5 = arith.andi %3, %4 : vector<1x32xi32>
    %6 = arith.subi %3, %5 : vector<1x32xi32>
    %7 = arith.sitofp %6 : vector<1x32xi32> to vector<1x32xf32>
    %cst_1 = arith.constant -0.287823141 : f32
    %8 = vector.broadcast %cst_1 : f32 to vector<1x32xf32>
    %9 = arith.mulf %7, %8 : vector<1x32xf32>
    %10 = math.exp %9 : vector<1x32xf32>
    %c1_i32_2 = arith.constant 1 : i32
    %11 = vector.broadcast %c1_i32_2 : i32 to vector<1x32xi32>
    %12 = arith.andi %3, %11 : vector<1x32xi32>
    %13 = arith.sitofp %12 : vector<1x32xi32> to vector<1x32xf32>
    %cst_3 = arith.constant 1.57079637 : f32
    %14 = vector.broadcast %cst_3 : f32 to vector<1x32xf32>
    %15 = arith.mulf %13, %14 : vector<1x32xf32>
    %c8_i32 = arith.constant 8 : i32
    %16 = arith.muli %arg0, %c8_i32 : i32
    %17 = arith.sitofp %16 : i32 to f32
    %18 = tpu.iota {dimensions = array<i32: 0>} : vector<16x1xi32>
    %19 = arith.sitofp %18 : vector<16x1xi32> to vector<16x1xf32>
    %cst_4 = arith.constant 5.000000e-01 : f32
    %20 = vector.broadcast %cst_4 : f32 to vector<16x1xf32>
    %21 = arith.addf %19, %20 : vector<16x1xf32>
    %cst_5 = arith.constant 2.000000e+00 : f32
    %22 = vector.broadcast %cst_5 : f32 to vector<16x1xf32>
    %23 = arith.divf %21, %22 : vector<16x1xf32>
    %24 = math.floor %23 : vector<16x1xf32>
    %25 = vector.broadcast %17 : f32 to vector<16x1xf32>
    %26 = arith.addf %25, %24 : vector<16x1xf32>
    %27 = vector.broadcast %26 : vector<16x1xf32> to vector<16x32xf32>
    %28 = vector.broadcast %10 : vector<1x32xf32> to vector<16x32xf32>
    %29 = arith.mulf %27, %28 : vector<16x32xf32>
    %30 = vector.broadcast %15 : vector<1x32xf32> to vector<16x32xf32>
    %31 = arith.addf %29, %30 : vector<16x32xf32>
    %32 = math.sin %31 : vector<16x32xf32>
    %33 = arith.addf %2, %32 : vector<16x32xf32>
    %c0_6 = arith.constant 0 : index
    %c0_7 = arith.constant 0 : index
    %34 = vector.load %arg3[%c0_6, %c0_7] : memref<16x32xf32, #tpu.memory_space<vmem>>, vector<16x32xf32>
    tpu.vector_store %arg3[%c0_6, %c0_7], %33 {strides = array<i32>} : memref<16x32xf32, #tpu.memory_space<vmem>>, vector<16x32xf32>,
    return
  }
  func.func @transform_0(%arg0: i32, %arg1: memref<1xi32, #tpu.memory_space<smem>>) -> (i32, i32) {
    %c0_i32 = arith.constant 0 : i32
    %c0_i32_0 = arith.constant 0 : i32
    return %arg0, %c0_i32 : i32, i32
  }
  func.func @transform_1(%arg0: i32, %arg1: memref<1xi32, #tpu.memory_space<smem>>) -> (i32, i32) {
    %c0_i32 = arith.constant 0 : i32
    %c0_i32_0 = arith.constant 0 : i32
    return %arg0, %c0_i32 : i32, i32
  }
}

</mosaic_0001>

<bundles_post_ra>
// kernel: tpu_custom_call.1
= control target key start
LH: loop header
LB: loop body
LE: loop exit
PB: predicated region body
PF: predicated region fallthrough
CT: control target
= control target key end

     0   :  { %8 = vsyncpa [#allocation5], 0  ;;  %s501_s0 = inlined_call_operand.<no memory space> [shape: s32[1], index: 0, kind: input, shape index: {}]   ;;  %s502_s1 = inlined_call_operand.hbm [shape: f32[16,32], index: 1, kind: input, shape index: {}, may-alias: {1,2}]   ;;  %s503_s2 = inlined_call_operand.hbm [shape: f32[16,32], index: 2, kind: output, shape index: {}, may-alias: {1,2}]  }
   0x1   :  { %9 = vsyncpa [#allocation6], 0  ;;  %s374_s9 = smov [#allocation4]   ;;  %s326_s13 = scalar_lea.hbm %s502_s1, 256 }
   0x2   :  { %s15_s10 = sshll.u32 %s374_s9, 4  ;;  %p327_p0 = scmp.ne.s32.totalorder %s502_s1, %s326_s13  ;;  %s16_s10 = int_to_ptr.vmem [resolvable:$true] %s15_s10 }
   0x3   :  { %p330_p1 = scmp.lt.u32.totalorder %s326_s13, %s502_s1 }
   0x5   :  { %p332_p2 = pnand %p330_p1, %p327_p0 }
   0x7   :  { %335 = shalt.err (!%p332_p2)
}
   0x8   :  { %s336_s17 = scalar_lea.vmem %s16_s10, 256  ;;  %p341_p4 = scmp.lt.s32.totalorder %s16_s10, %s16_s10 }
   0x9   :  { %p337_p3 = scmp.ne.s32.totalorder %s16_s10, %s336_s17  ;;  %p342_p5 = scmp.lt.s32.totalorder %s336_s17, %s336_s17 }
   0xb   :  { %p343_p6 = por %p342_p5, %p341_p4 }
   0xd   :  { %p344_p7 = pnand %p343_p6, %p337_p3 }
   0xf   :  { %347 = shalt.err (!%p344_p7)
}
  0x10   :  { %s375_s18 = smov 128   ;;  %s376_s19 = smov 8  }
  0x11   :  { %21 = dma.hbm_to_vmem [thread:$0]  %s502_s1, 256, %s16_s10, [#allocation5], %s375_s18, %s375_s18, %s376_s19  }
  0x12   :  { %370 = dma.done.wait [#allocation5], 256  }
  0x13   :  { %371 = vsyncadd [#allocation5], 4294967040  ;;  %v29_v0 = vlaneseq  ;;  %v377_v46 = vmov 683565275   ;;  %v378_v48 = vmov 2475754826  }
  0x14   :  { %v379_v50 = vmov 2131351028   ;;  %v380_v52 = vmov 2102212464   ;;  %v381_v54 = vmov 920167782  }
  0x15   :  { %v30_v1 = vand.u32 127, %v29_v0  ;;  %v42_v2 = vshrl.u32 %v29_v0, 7  ;;  %v382_v62 = vmov 1326507024   ;;  %s383_s1 = smov [#allocation7]  }
  0x16   :  { %s278_s22 = sshll.u32 %s383_s1, 4  ;;  %s279_s22 = int_to_ptr.vmem [resolvable:$true] %s278_s22 }
  0x17   :  { %v31_v3 = vand.u32 1, %v30_v1  ;;  %v43_v4 = vadd.s32 8, %v42_v2  ;;  %v44_v7 = vcvt.s32.f32 %v42_v2  ;;  %s348_s23 = scalar_lea.vmem %s279_s22, 256  ;;  %p353_p9 = scmp.lt.s32.totalorder %s279_s22, %s279_s22 }
  0x18   :  { %p349_p8 = scmp.ne.s32.totalorder %s279_s22, %s348_s23  ;;  %p354_p10 = scmp.lt.s32.totalorder %s348_s23, %s348_s23 }
  0x19   :  { %v32_v5 = vsub.s32 %v30_v1, %v31_v3  ;;  %v45_v8 = vcvt.s32.f32 %v43_v4  ;;  %v46_v11 = vadd.f32 0.5, %v44_v7  ;;  %v37_v15 = vcvt.s32.f32 %v31_v3 }
  0x1a   :  { %p355_p11 = por %p354_p10, %p353_p9 }
  0x1b   :  { %v33_v6 = vcvt.s32.f32 %v32_v5  ;;  %v47_v12 = vadd.f32 0.5, %v45_v8  ;;  %v49_v13 = vmul.f32 0.5, %v46_v11  ;;  %v38_v18 = vmul.f32 1.5707964, %v37_v15 }
  0x1c   :  { %p356_p12 = pnand %p355_p11, %p349_p8 }
  0x1d   :  { %v34_v9 = vmul.f32 -0.28782314, %v33_v6  ;;  %v50_v14 = vmul.f32 0.5, %v47_v12  ;;  %v51_v16 = vfloor.f32 %v49_v13 }
  0x1f   :  { %v35_v10 = vmul.f32 1.442695, %v34_v9  ;;  %v52_v17 = vfloor.f32 %v50_v14 }
  0x21   :  { %316 = vpow2.f32 %v35_v10 }
  0x2b   :  { %v317_v19 = vpop.eup %316 }
  0x2c   :  { %v56_v20 = vmul.f32 %v317_v19, %v51_v16  ;;  %v57_v21 = vmul.f32 %v317_v19, %v52_v17 }
  0x2e   :  { %v414_v22 = vadd.f32 %v56_v20, %v38_v18  ;;  %v416_v23 = vadd.f32 %v57_v21, %v38_v18 }
  0x30   :  { %v60_v24 = vand.u32 2147483647, %v414_v22  ;;  %v63_v25 = vand.u32 2139095040, %v414_v22  ;;  %v164_v26 = vand.u32 2147483647, %v416_v23  ;;  %v167_v27 = vand.u32 2139095040, %v416_v23 }
  0x31   :  { %vm62_vm14 = vcmp.lt.s32.totalorder %v414_v22, 0 }
  0x32   :  { %v64_v28 = vshrl.u32 %v63_v25, 23  ;;  %v67_v29 = vand.u32 8388607, %v60_v24  ;;  %v168_v30 = vshrl.u32 %v167_v27, 23  ;;  %v171_v31 = vand.u32 8388607, %v164_v26 }
  0x33   :  { %vm61_vm15 = vcmp.le.f32.partialorder %v60_v24, 0.7853982 }
  0x34   :  { %v290_v32 = vadd.s32 4294967169, %v64_v28  ;;  %v294_v33 = vadd.s32 4294967169, %v168_v30  ;;  %v68_v35 = vor.u32 8388608, %v67_v29  ;;  %v172_v36 = vor.u32 8388608, %v171_v31 }
  0x36   :  { %v70_v34 = vadd.s32 1, %v290_v32  ;;  %v174_v37 = vadd.s32 1, %v294_v33  ;;  %v426_v42 = vshll.u32 %v68_v35, 8  ;;  %v428_v44 = vshll.u32 %v172_v36, 8 }
  0x38   :  { %vm71_vm0 = vcmp.gt.s32.totalorder %v70_v34, 0  ;;  %vm175_vm1 = vcmp.gt.s32.totalorder %v174_v37, 0 }
  0x39   :  { %v72_v38 = vsel %vm71_vm0, %v70_v34, 0  ;;  %v176_v41 = vsel %vm175_vm1, %v174_v37, 0  ;;  %vm166_vm0 = vcmp.lt.s32.totalorder %v416_v23, 0  ;;  %vm165_vm1 = vcmp.le.f32.partialorder %v164_v26, 0.7853982 }
  0x3a   :  { %v73_v39 = vshrl.u32 %v72_v38, 5  ;;  %v74_v40 = vand.u32 31, %v72_v38  ;;  %v178_v43 = vand.u32 31, %v176_v41  ;;  %v430_v56 = vshrl.u32 %v176_v41, 5 }
  0x3c   :  { %v75_v45 = vsub.s32 32, %v74_v40  ;;  %v77_v47 = vshll.u32 %v377_v46, %v74_v40  ;;  %v80_v49 = vshll.u32 %v378_v48, %v74_v40  ;;  %v83_v51 = vshll.u32 %v379_v50, %v74_v40 }
  0x3d   :  { %v86_v53 = vshll.u32 %v380_v52, %v74_v40  ;;  %v89_v55 = vshll.u32 %v381_v54, %v74_v40  ;;  %vm92_vm2 = vcmp.lt.s32.totalorder %v73_v39, 1  ;;  %vm93_vm3 = vcmp.lt.s32.totalorder %v73_v39, 2 }
  0x3e   :  { %v76_v57 = vshrl.u32 %v377_v46, %v75_v45  ;;  %v78_v58 = vshrl.u32 %v378_v48, %v75_v45  ;;  %v81_v59 = vshrl.u32 %v379_v50, %v75_v45  ;;  %v84_v60 = vshrl.u32 %v380_v52, %v75_v45 }
  0x3f   :  { %v87_v61 = vshrl.u32 %v381_v54, %v75_v45  ;;  %v90_v63 = vshrl.u32 %v382_v62, %v75_v45  ;;  %vm95_vm4 = vcmp.lt.s32.totalorder %v73_v39, 4  ;;  %v179_v3 = vsub.s32 32, %v178_v43 }
  0x40   :  { %v79_v0 = vor.u32 %v78_v58, %v77_v47  ;;  %v82_v1 = vor.u32 %v81_v59, %v80_v49  ;;  %v85_v2 = vor.u32 %v84_v60, %v83_v51  ;;  %vm94_vm5 = vcmp.lt.s32.totalorder %v73_v39, 3 }
  0x41   :  { %v88_v4 = vor.u32 %v87_v61, %v86_v53  ;;  %v91_v5 = vor.u32 %v90_v63, %v89_v55  ;;  %v181_v6 = vshll.u32 %v377_v46, %v178_v43  ;;  %v184_v14 = vshll.u32 %v378_v48, %v178_v43 }
  0x42   :  { %v96_v7 = vsel %vm92_vm2, %v76_v57, %v79_v0  ;;  %v97_v8 = vsel %vm95_vm4, %v85_v2, 2102212464  ;;  %v100_v9 = vsel %vm92_vm2, %v79_v0, %v82_v1  ;;  %v104_v10 = vsel %vm92_vm2, %v82_v1, %v85_v2 }
  0x43   :  { %v98_v11 = vsel %vm94_vm5, %v82_v1, %v97_v8  ;;  %v101_v12 = vsel %vm95_vm4, %v88_v4, 920167782  ;;  %v105_v13 = vsel %vm95_vm4, %v91_v5, 1326507024  ;;  %v180_v17 = vshrl.u32 %v377_v46, %v179_v3 }
  0x44   :  { %v102_v15 = vsel %vm94_vm5, %v85_v2, %v101_v12  ;;  %v106_v16 = vsel %vm94_vm5, %v88_v4, %v105_v13  ;;  %v182_v18 = vshrl.u32 %v378_v48, %v179_v3  ;;  %v99_v19 = vsel %vm93_vm3, %v96_v7, %v98_v11 }
  0x45   :  { %v103_v20 = vsel %vm93_vm3, %v100_v9, %v102_v15  ;;  %v107_v21 = vsel %vm93_vm3, %v104_v10, %v106_v16  ;;  %v185_v25 = vshrl.u32 %v379_v50, %v179_v3  ;;  %v187_v33 = vshll.u32 %v379_v50, %v178_v43 }
  0x46   :  { %v439_v27 = vmul.u32.u64.low %v426_v42, %v107_v21  ;;  %v440_v28 = vmul.u32.u64.high %v426_v42, %v107_v21, %v439_v27  ;;  %v443_v29 = vmul.u32.u64.low %v426_v42, %v103_v20  ;;  %v444_v30 = vmul.u32.u64.high %v426_v42, %v103_v20, %v443_v29 }
  0x47   :  { %v183_v31 = vor.u32 %v182_v18, %v181_v6  ;;  %v186_v32 = vor.u32 %v185_v25, %v184_v14  ;;  %v188_v34 = vshrl.u32 %v380_v52, %v179_v3  ;;  %v190_v35 = vshll.u32 %v380_v52, %v178_v43 }
  0x48   :  { %v191_v36 = vshrl.u32 %v381_v54, %v179_v3  ;;  %v193_v37 = vshll.u32 %v381_v54, %v178_v43  ;;  %v194_v38 = vshrl.u32 %v382_v62, %v179_v3  ;;  %v115_v39 = vmul.u32 %v426_v42, %v99_v19 }
  0x49   :  { %v189_v40 = vor.u32 %v188_v34, %v187_v33  ;;  %vm196_vm6 = vcmp.lt.s32.totalorder %v430_v56, 1  ;;  %vm197_vm7 = vcmp.lt.s32.totalorder %v430_v56, 2  ;;  %vm117_vm8 = vc.u32 %v440_v28, %v443_v29 }
  0x4a   :  { %v118_v41 = vadd.s32 1, %v444_v30  ;;  %v192_v45 = vor.u32 %v191_v36, %v190_v35  ;;  %vm198_vm9 = vcmp.lt.s32.totalorder %v430_v56, 3  ;;  %v195_v46 = vor.u32 %v194_v38, %v193_v37 }
  0x4b   :  { %vm199_vm10 = vcmp.lt.s32.totalorder %v430_v56, 4  ;;  %v200_v47 = vsel %vm196_vm6, %v180_v17, %v183_v31  ;;  %v204_v43 = vsel %vm196_vm6, %v183_v31, %v186_v32  ;;  %v208_v50 = vsel %vm196_vm6, %v186_v32, %v189_v40 }
  0x4c   :  { %v119_v48 = vsel %vm117_vm8, %v118_v41, %v444_v30  ;;  %v201_v42 = vsel %vm199_vm10, %v189_v40, 2102212464  ;;  %v205_v49 = vsel %vm199_vm10, %v192_v45, 920167782  ;;  %v209_v54 = vsel %vm199_vm10, %v195_v46, 1326507024 }
  0x4d   :  { %v120_v51 = vadd.s32 %v119_v48, %v115_v39  ;;  %v202_v52 = vsel %vm198_vm9, %v186_v32, %v201_v42  ;;  %v206_v53 = vsel %vm198_vm9, %v189_v40, %v205_v49  ;;  %v210_v58 = vsel %vm198_vm9, %v192_v45, %v209_v54 }
  0x4e   :  { %v203_v55 = vsel %vm197_vm7, %v200_v47, %v202_v52  ;;  %v207_v57 = vsel %vm197_vm7, %v204_v43, %v206_v53  ;;  %v211_v60 = vsel %vm197_vm7, %v208_v50, %v210_v58  ;;  %v116_v15 = vadd.s32 %v443_v29, %v440_v28 }
  0x4f   :  { %v121_v59 = vadd.s32 536870912, %v120_v51  ;;  %v461_v61 = vmul.u32.u64.low %v428_v44, %v207_v57  ;;  %v462_v62 = vmul.u32.u64.high %v428_v44, %v207_v57, %v461_v61  ;;  %v219_v2 = vmul.u32 %v428_v44, %v203_v55 }
  0x50   :  { %v465_v63 = vmul.u32.u64.low %v428_v44, %v211_v60  ;;  %v466_v0 = vmul.u32.u64.high %v428_v44, %v211_v60, %v465_v63  ;;  %vm152_vm5 = vweird.f32 %v414_v22  ;;  %vm270_vm6 = vcmask 261120  }
  0x51   :  { %v122_v1 = vshrl.u32 %v121_v59, 30  ;;  %v222_v4 = vadd.s32 1, %v462_v62  ;;  %vm256_vm10 = vweird.f32 %v416_v23 }
  0x52   :  { %vm221_vm11 = vc.u32 %v466_v0, %v461_v61  ;;  %v220_v35 = vadd.s32 %v461_v61, %v466_v0  ;;  %v25_v0 = vld [vmem:[#allocation4] sm:$0xff] }
  0x53   :  { %v123_v3 = vshll.u32 %v122_v1, 30  ;;  %v223_v56 = vsel %vm221_vm11, %v222_v4, %v462_v62  ;;  %v146_v28 = vsub.s32 4, %v122_v1 }
  0x54   :  { %v224_v6 = vadd.s32 %v223_v56, %v219_v2 }
  0x55   :  { %v124_v5 = vsub.s32 %v120_v51, %v123_v3  ;;  %v147_v47 = vsel %vm62_vm14, %v146_v28, %v122_v1 }
  0x56   :  { %v225_v8 = vadd.s32 536870912, %v224_v6  ;;  %v149_v50 = vsel %vm61_vm15, 0, %v147_v47 }
  0x57   :  { %v126_v7 = vsub.s32 0, %v124_v5  ;;  %v153_v55 = vadd.s32 3, %v149_v50 }
  0x58   :  { %v226_v10 = vshrl.u32 %v225_v8, 30 }
  0x59   :  { %v291_v9 = vmin.u32 %v126_v7, %v124_v5  ;;  %v154_v59 = vand.u32 3, %v153_v55 }
  0x5a   :  { %v227_v12 = vshll.u32 %v226_v10, 30  ;;  %v250_v54 = vsub.s32 4, %v226_v10 }
  0x5b   :  { %v128_v11 = vclz %v291_v9  ;;  %vm159_vm2 = vcmp.eq.s32.totalorder %v154_v59, 2  ;;  %vm156_vm3 = vcmp.eq.s32.totalorder %v154_v59, 0  ;;  %vm155_vm4 = vcmp.lt.s32.totalorder %v154_v59, 2 }
  0x5c   :  { %v228_v14 = vsub.s32 %v224_v6, %v227_v12  ;;  %v251_v58 = vsel %vm166_vm0, %v250_v54, %v226_v10 }
  0x5d   :  { %v292_v13 = vadd.s32 4294967294, %v128_v11  ;;  %v253_v62 = vsel %vm165_vm1, 0, %v251_v58  ;;  %v26_v11 = vld [vmem:[#allocation4 + $0x8] sm:$0xff] }
  0x5e   :  { %v230_v16 = vsub.s32 0, %v228_v14  ;;  %v257_v3 = vadd.s32 3, %v253_v62 }
  0x5f   :  { %vm293_vm12 = vcmp.lt.s32.totalorder %v292_v13, 0 }
  0x60   :  { %v131_v44 = vsel %vm293_vm12, 0, %v292_v13  ;;  %v295_v20 = vmin.u32 %v230_v16, %v228_v14  ;;  %v258_v7 = vand.u32 3, %v257_v3 }
  0x61   :  { %v132_v17 = vsub.s32 32, %v131_v44  ;;  %v133_v18 = vshll.u32 %v124_v5, %v131_v44  ;;  %v136_v19 = vsub.s32 4294967266, %v131_v44  ;;  %v27_v5 = vmul.f32 5.656854, %v25_v0 }
  0x62   :  { %v232_v27 = vclz %v295_v20  ;;  %vm263_vm7 = vcmp.eq.s32.totalorder %v258_v7, 2  ;;  %vm260_vm8 = vcmp.eq.s32.totalorder %v258_v7, 0  ;;  %vm259_vm9 = vcmp.lt.s32.totalorder %v258_v7, 2 }
  0x63   :  { %v134_v21 = vshrl.u32 %v116_v15, %v132_v17  ;;  %v137_v25 = vadd.s32 127, %v136_v19  ;;  %v28_v15 = vmul.f32 5.656854, %v26_v11 }
  0x64   :  { %v296_v32 = vadd.s32 4294967294, %v232_v27 }
  0x65   :  { %v135_v30 = vor.u32 %v134_v21, %v133_v18  ;;  %v138_v31 = vshll.u32 %v137_v25, 23 }
  0x66   :  { %vm297_vm13 = vcmp.lt.s32.totalorder %v296_v32, 0 }
  0x67   :  { %v139_v33 = vor.u32 4788187, %v138_v31  ;;  %v142_v34 = vcvt.s32.f32 %v135_v30  ;;  %v235_v29 = vsel %vm297_vm13, 0, %v296_v32 }
  0x68   :  { %v236_v37 = vsub.s32 32, %v235_v29  ;;  %v237_v38 = vshll.u32 %v228_v14, %v235_v29  ;;  %v240_v39 = vsub.s32 4294967266, %v235_v29 }
  0x69   :  { %v140_v36 = vand.u32 2147483647, %v139_v33 }
  0x6a   :  { %v238_v41 = vshrl.u32 %v220_v35, %v236_v37  ;;  %v241_v45 = vadd.s32 127, %v240_v39 }
  0x6b   :  { %v143_v40 = vmul.f32 %v142_v34, %v140_v36 }
  0x6c   :  { %v239_v43 = vor.u32 %v238_v41, %v237_v38  ;;  %v242_v48 = vshll.u32 %v241_v45, 23 }
  0x6d   :  { %v144_v46 = vxor.u32 2147483648, %v143_v40 }
  0x6e   :  { %v243_v51 = vor.u32 4788187, %v242_v48  ;;  %v246_v52 = vcvt.s32.f32 %v239_v43 }
  0x6f   :  { %v145_v42 = vsel %vm62_vm14, %v144_v46, %v143_v40 }
  0x70   :  { %v148_v49 = vsel %vm61_vm15, %v414_v22, %v145_v42  ;;  %v244_v53 = vand.u32 2147483647, %v243_v51 }
  0x71   :  { %318 = vcosq.f32 %v148_v49 }
  0x72   :  { %320 = vsinq.f32 %v148_v49  ;;  %v247_v57 = vmul.f32 %v246_v52, %v244_v53 }
  0x74   :  { %v248_v24 = vxor.u32 2147483648, %v247_v57 }
  0x76   :  { %v249_v60 = vsel %vm166_vm0, %v248_v24, %v247_v57 }
  0x77   :  { %v252_v61 = vsel %vm165_vm1, %v416_v23, %v249_v60 }
  0x78   :  { %322 = vcosq.f32 %v252_v61 }
  0x79   :  { %324 = vsinq.f32 %v252_v61 }
  0x7b   :  { %v319_v63 = vpop.eup %318 }
  0x7c   :  { %v321_v1 = vpop.eup %320  ;;  %v160_v2 = vxor.u32 2147483648, %v319_v63 }
  0x7d   :  { %v157_v4 = vxor.u32 2147483648, %v321_v1 }
  0x7e   :  { %v161_v26 = vsel %vm159_vm2, %v160_v2, %v321_v1 }
  0x7f   :  { %v158_v56 = vsel %vm156_vm3, %v319_v63, %v157_v4 }
  0x80   :  { %v162_v6 = vsel %vm155_vm4, %v158_v56, %v161_v26 }
  0x81   :  { %v163_v8 = vsel %vm152_vm5, nan, %v162_v6 }
  0x82   :  { %v268_v9 = vadd.f32 %v163_v8, %v27_v5  ;;  %v323_v10 = vpop.eup %322 }
  0x83   :  { %v325_v12 = vpop.eup %324  ;;  %v264_v13 = vxor.u32 2147483648, %v323_v10 }
  0x84   :  { %271 = vst.msk [vmem:[#allocation7] sm:$0xff] %vm270_vm6, %v268_v9  ;;  %v261_v14 = vxor.u32 2147483648, %v325_v12 }
  0x85   :  { %v265_v22 = vsel %vm263_vm7, %v264_v13, %v325_v12 }
  0x86   :  { %v262_v44 = vsel %vm260_vm8, %v323_v10, %v261_v14 }
  0x87   :  { %v266_v16 = vsel %vm259_vm9, %v262_v44, %v265_v22 }
  0x88   :  { %v267_v17 = vsel %vm256_vm10, nan, %v266_v16 }
  0x89   :  { %v269_v18 = vadd.f32 %v267_v17, %v28_v15 }
  0x8b   :  { %272 = vst.msk [vmem:[#allocation7 + $0x8] sm:$0xff] %vm270_vm6, %v269_v18 }
  0x8c   :  { %359 = shalt.err (!%p356_p12)
}
  0x8d   :  { %s360_s26 = scalar_lea.hbm %s503_s2, 256 }
  0x8e   :  { %p361_p13 = scmp.ne.s32.totalorder %s503_s2, %s360_s26  ;;  %p364_p0 = scmp.lt.u32.totalorder %s360_s26, %s503_s2 }
  0x90   :  { %p366_p1 = pnand %p364_p0, %p361_p13 }
  0x92   :  { %369 = shalt.err (!%p366_p1)
}
  0x93   :  { %284 = dma.vmem_to_hbm [thread:$0]  %s279_s22, 256, %s503_s2, [#allocation6], %s375_s18, %s375_s18, %s376_s19  }
  0x94   :  { %372 = dma.done.wait [#allocation6], 256  }
  0x95   :  { %373 = vsyncadd [#allocation6], 4294967040 }
  0x96   :  { %288 = vsyncpa [#allocation5], 1 }
  0x97   :  { %289 = vsyncpa [#allocation6], 1 }

</bundles_post_ra>
